<compile_context>
chip_gen: v5e
topology: v5e:2x2
jax: 0.10.0
libtpu: 0.0.40
codegen_flags: <defaults>
</compile_context>

<pallas_src>
import jax
import jax.numpy as jnp
from jax.experimental import pallas as pl
from jax.experimental.pallas import tpu as pltpu


# ----------------------------- model config ---------------------------------
VOCAB_SIZE = 50
EMBEDDING_DIM = 32
N_FILTERS = 16
FILTER_SIZES = (3, 4, 5)
MAX_FS = max(FILTER_SIZES)
OUTPUT_DIM = 8
PAD_IDX = 0
BATCH = 2
SEQ_LEN = 16

TAP_COLS = len(FILTER_SIZES) * N_FILTERS          # 48 = all filters' channels
TW_COLS = MAX_FS * TAP_COLS                       # 240 = tap-major fused width
OUT_PAD = 128                                     # lane-dense output width
NEG_INF = jnp.float32(-1e30)


# ------------------------------ Pallas kernel -------------------------------
def textcnn_kernel(ids_ref, tw_ref, mask_ref, bconv_ref, wfc_ref, bfc_ref,
                   out_ref):
    """Fused one-hot-gather conv + masked max/bias/relu + FC, all in VMEM."""
    BS = BATCH * SEQ_LEN

    # ---- fused embedding gather + ALL conv taps: ONE MXU matmul (opt 1) ----
    # tw[v, k*48 + f*16 + c] = table[v] @ W_f[k][:, c]  (0 block for k >= fs_f)
    # NOTE: ids outside [0, VOCAB) silently give a zero embedding row.
    ids = ids_ref[...]                                              # (BS, 1) i32
    vocab_iota = jax.lax.broadcasted_iota(jnp.int32, (BS, VOCAB_SIZE), 1)
    onehot = jnp.where(vocab_iota == ids, 1.0, 0.0).astype(jnp.bfloat16)
    y = jnp.dot(onehot, tw_ref[...],
                preferred_element_type=jnp.float32)                 # (BS, 240) f32

    # ---- tap-sum via XLU row-rolls (opt 2): conv[r] = sum_k y[r+k, tap k] ---
    acc = y[:, 0:TAP_COLS]                                          # tap 0 (aligned)
    for k in range(1, MAX_FS):
        piece = y[:, k * TAP_COLS:(k + 1) * TAP_COLS]               # (BS, 48)
        # roll by BS-k  ==  row r picks up y[r+k]; wrapped rows are masked below
        acc = acc + pltpu.roll(piece, BS - k, axis=0)
    acc = acc + mask_ref[...]                                       # -inf at invalid t

    # ---- single masked max-over-time + bias + ReLU on (B,S,48) (opt 4) -----
    # (exact: ReLU monotone and conv bias constant over time)
    pooled = jnp.max(acc.reshape(BATCH, SEQ_LEN, TAP_COLS), axis=1)  # (B, 48)
    pooled = jnp.maximum(pooled + bconv_ref[...], 0.0)

    # ---- ONE lane-dense FC matmul (opt 3) -----------------------------------
    # TODO(synk): dropout is identity at inference time (no RNG mask applied).
    out_ref[...] = (jnp.dot(pooled, wfc_ref[...],
                            preferred_element_type=jnp.float32)
                    + bfc_ref[...])


# --------------------------- parameter packing -------------------------------
def pack_params(emb_table, conv_ws, conv_bs, fc_w, fc_b):
    """One-time model-load packing: fuse table@W (tap-major), masks, pads."""
    # bf16-rounded table / weights (MXU input precision); f32-accumulated
    # products, rounded to bf16 ONCE (review correctness note).
    table_bf = emb_table.astype(jnp.bfloat16).astype(jnp.float32)        # (V, E)
    tap_blocks = []
    for k in range(MAX_FS):
        for f_idx, fs in enumerate(FILTER_SIZES):
            if k < fs:
                wk = conv_ws[f_idx][k].astype(jnp.bfloat16).astype(jnp.float32)
                tap_blocks.append(jnp.dot(table_bf, wk,
                                          precision=jax.lax.Precision.HIGHEST))
            else:
                tap_blocks.append(jnp.zeros((VOCAB_SIZE, N_FILTERS),
                                            jnp.float32))
    tw = jnp.concatenate(tap_blocks, axis=1).astype(jnp.bfloat16)        # (V, 240)

    # additive validity mask: position t valid for filter width fs iff t <= S-fs
    t = jnp.arange(SEQ_LEN)[:, None]
    mask_cols = [jnp.broadcast_to(
                     jnp.where(t <= SEQ_LEN - fs, 0.0, NEG_INF).astype(jnp.float32),
                     (SEQ_LEN, N_FILTERS))
                 for fs in FILTER_SIZES]
    mask = jnp.tile(jnp.concatenate(mask_cols, axis=1), (BATCH, 1))      # (B*S, 48)

    bconv = jnp.concatenate(conv_bs, axis=1).astype(jnp.float32)         # (1, 48)
    wfc = jnp.zeros((TAP_COLS, OUT_PAD), jnp.float32).at[:, :OUTPUT_DIM].set(fc_w)
    bfc = jnp.zeros((1, OUT_PAD), jnp.float32).at[:, :OUTPUT_DIM].set(fc_b)
    return tw, mask, bconv, wfc, bfc


# ------------------------------- wrapper -------------------------------------
def textcnn_forward(text, packed):
    """text: (B, S) int32 token ids -> logits (B, OUTPUT_DIM) float32."""
    tw, mask, bconv, wfc, bfc = packed
    B, S = text.shape
    ids = text.reshape(B * S, 1).astype(jnp.int32)

    vmem = pl.BlockSpec(memory_space=pltpu.MemorySpace.VMEM)
    # No grid: whole working set (~35 KB) fits VMEM; the kernel is launch/
    # latency bound at this size.  For large B on v7x, grid the folded B*S row
    # axis with dimension_semantics=("parallel",) so both TensorCores get work.
    out_pad = pl.pallas_call(
        textcnn_kernel,
        out_shape=jax.ShapeDtypeStruct((B, OUT_PAD), jnp.float32),
        in_specs=[vmem] * 6,
        out_specs=vmem,
    )(ids, tw, mask, bconv, wfc, bfc)
    return out_pad[:, :OUTPUT_DIM]


# --------------------------- parameter construction -------------------------
def init_params(key):
    keys = jax.random.split(key, 2 + 2 * len(FILTER_SIZES) + 2)
    it = iter(keys)

    # nn.Embedding(vocab, emb_dim, padding_idx=pad_idx)
    emb_table = 0.1 * jax.random.normal(next(it), (VOCAB_SIZE, EMBEDDING_DIM),
                                        jnp.float32)
    emb_table = emb_table.at[PAD_IDX].set(0.0)

    # nn.Conv2d(1, n_filters, (fs, emb_dim)) stored as (fs, E, nf)
    conv_ws, conv_bs = [], []
    for fs in FILTER_SIZES:
        w = 0.1 * jax.random.normal(next(it), (fs, EMBEDDING_DIM, N_FILTERS),
                                    jnp.float32)
        b = 0.1 * jax.random.normal(next(it), (1, N_FILTERS), jnp.float32)
        conv_ws.append(w)
        conv_bs.append(b)

    # nn.Linear(len(filter_sizes)*n_filters, output_dim): stored as (in, out)
    fc_w = 0.1 * jax.random.normal(
        next(it), (len(FILTER_SIZES) * N_FILTERS, OUTPUT_DIM), jnp.float32)
    fc_b = 0.1 * jax.random.normal(next(it), (1, OUTPUT_DIM), jnp.float32)

    return emb_table, conv_ws, conv_bs, fc_w, fc_b


# ------------------------------ JAX reference --------------------------------
def reference_forward(text, emb_table, conv_ws, conv_bs, fc_w, fc_b):
    # Mirrors the kernel's MXU input precision (bf16 table/weights, f32 acc),
    # but uses the natural torch ordering (bias + relu before max, concat + fc).
    emb = emb_table.astype(jnp.bfloat16)[text]                       # (B, S, E)
    pooled = []
    for w, b in zip(conv_ws, conv_bs):
        fs = w.shape[0]
        L = SEQ_LEN - fs + 1
        acc = jnp.zeros((BATCH, L, N_FILTERS), jnp.float32)
        for k in range(fs):
            acc = acc + jnp.einsum(
                "ble,ef->blf", emb[:, k:k + L, :], w[k].astype(jnp.bfloat16),
                preferred_element_type=jnp.float32,
                precision=jax.lax.Precision.HIGHEST)
        acc = jax.nn.relu(acc + b)
        pooled.append(jnp.max(acc, axis=1))
    cat = jnp.concatenate(pooled, axis=1)
    return jnp.dot(cat, fc_w, preferred_element_type=jnp.float32,
                   precision=jax.lax.Precision.HIGHEST) + fc_b


# ---------------------------------- main -------------------------------------
if __name__ == "__main__":
    key = jax.random.PRNGKey(0)
    k_tok, k_par = jax.random.split(key)

    # integer token ids, shape (B, S)
    text = jax.random.randint(k_tok, (BATCH, SEQ_LEN), 0, VOCAB_SIZE,
                              dtype=jnp.int32)

    emb_table, conv_ws, conv_bs, fc_w, fc_b = init_params(k_par)
    packed = pack_params(emb_table, conv_ws, conv_bs, fc_w, fc_b)

    out = textcnn_forward(text, packed)
    out = jax.block_until_ready(out)

    ref = reference_forward(text, emb_table, conv_ws, conv_bs, fc_w, fc_b)
    assert out.shape == (BATCH, OUTPUT_DIM)
    # tolerance 2e-3: the fused table@W product is rounded to bf16 once more
    # than the two-step reference path (per the review's correctness note).
    assert jnp.allclose(out, ref, atol=2e-3, rtol=2e-3), "mismatch vs reference"

    print("KERNEL_OK")
</pallas_src>

<mosaic_0001>
module attributes {stable_mosaic.version = 11 : i64} {
  func.func @textcnn_kernel(%arg0: memref<32x1xi32, #tpu.memory_space<vmem>>, %arg1: memref<50x240xbf16, #tpu.memory_space<vmem>>, %arg2: memref<32x48xf32, #tpu.memory_space<vmem>>, %arg3: memref<1x48xf32, #tpu.memory_space<vmem>>, %arg4: memref<48x128xf32, #tpu.memory_space<vmem>>, %arg5: memref<1x128xf32, #tpu.memory_space<vmem>>, %arg6: memref<2x128xf32, #tpu.memory_space<vmem>>) attributes {dimension_semantics = [], scalar_prefetch = 0 : i64, scratch_operands = 0 : i64, tpu.core_type = #tpu.core_type<tc>} {
    %c0 = arith.constant 0 : index
    %c0_0 = arith.constant 0 : index
    %0 = vector.load %arg0[%c0, %c0_0] : memref<32x1xi32, #tpu.memory_space<vmem>>, vector<32x1xi32>
    %1 = tpu.iota {dimensions = array<i32: 1>} : vector<32x50xi32>
    %2 = vector.broadcast %0 : vector<32x1xi32> to vector<32x50xi32>
    %3 = arith.cmpi eq, %1, %2 : vector<32x50xi32>
    %cst = arith.constant 1.000000e+00 : f32
    %cst_1 = arith.constant 0.000000e+00 : f32
    %4 = vector.broadcast %cst : f32 to vector<32x50xf32>
    %5 = vector.broadcast %cst_1 : f32 to vector<32x50xf32>
    %6 = arith.select %3, %4, %5 : vector<32x50xi1>, vector<32x50xf32>
    %7 = arith.truncf %6 : vector<32x50xf32> to vector<32x50xbf16>
    %c0_2 = arith.constant 0 : index
    %c0_3 = arith.constant 0 : index
    %8 = vector.load %arg1[%c0_2, %c0_3] : memref<50x240xbf16, #tpu.memory_space<vmem>>, vector<50x240xbf16>
    %cst_4 = arith.constant dense<0.000000e+00> : vector<32x240xf32>
    %9 = tpu.matmul %7, %8, %cst_4 {dimension_numbers = #tpu.dot_dimension_numbers<[1], [0], [0], [1], [0, 0, 1, 1], [], []>} : vector<32x50xbf16>, vector<50x240xbf16>, vector<32x240xf32> -> vector<32x240xf32>
    %10 = vector.extract_strided_slice %9 {offsets = [0, 0], sizes = [32, 48], strides = [1, 1]} : vector<32x240xf32> to vector<32x48xf32>
    %11 = vector.extract_strided_slice %9 {offsets = [0, 48], sizes = [32, 48], strides = [1, 1]} : vector<32x240xf32> to vector<32x48xf32>
    %c31_i32 = arith.constant 31 : i32
    %12 = tpu.dynamic_rotate %11 by %c31_i32 dim 0 : vector<32x48xf32>, i32 -> vector<32x48xf32>
    %13 = arith.addf %10, %12 : vector<32x48xf32>
    %14 = vector.extract_strided_slice %9 {offsets = [0, 96], sizes = [32, 48], strides = [1, 1]} : vector<32x240xf32> to vector<32x48xf32>
    %c30_i32 = arith.constant 30 : i32
    %15 = tpu.dynamic_rotate %14 by %c30_i32 dim 0 : vector<32x48xf32>, i32 -> vector<32x48xf32>
    %16 = arith.addf %13, %15 : vector<32x48xf32>
    %17 = vector.extract_strided_slice %9 {offsets = [0, 144], sizes = [32, 48], strides = [1, 1]} : vector<32x240xf32> to vector<32x48xf32>
    %c29_i32 = arith.constant 29 : i32
    %18 = tpu.dynamic_rotate %17 by %c29_i32 dim 0 : vector<32x48xf32>, i32 -> vector<32x48xf32>
    %19 = arith.addf %16, %18 : vector<32x48xf32>
    %20 = vector.extract_strided_slice %9 {offsets = [0, 192], sizes = [32, 48], strides = [1, 1]} : vector<32x240xf32> to vector<32x48xf32>
    %c28_i32 = arith.constant 28 : i32
    %21 = tpu.dynamic_rotate %20 by %c28_i32 dim 0 : vector<32x48xf32>, i32 -> vector<32x48xf32>
    %22 = arith.addf %19, %21 : vector<32x48xf32>
    %c0_5 = arith.constant 0 : index
    %c0_6 = arith.constant 0 : index
    %23 = vector.load %arg2[%c0_5, %c0_6] : memref<32x48xf32, #tpu.memory_space<vmem>>, vector<32x48xf32>
    %24 = arith.addf %22, %23 : vector<32x48xf32>
    %25 = vector.shape_cast %24 : vector<32x48xf32> to vector<2x16x48xf32>
    %cst_7 = arith.constant dense<0xFF800000> : vector<2x48xf32>
    %26 = vector.multi_reduction <maximumf>, %25, %cst_7 [1] : vector<2x16x48xf32> to vector<2x48xf32>
    %c0_8 = arith.constant 0 : index
    %c0_9 = arith.constant 0 : index
    %27 = vector.load %arg3[%c0_8, %c0_9] : memref<1x48xf32, #tpu.memory_space<vmem>>, vector<1x48xf32>
    %28 = vector.broadcast %27 : vector<1x48xf32> to vector<2x48xf32>
    %29 = arith.addf %26, %28 : vector<2x48xf32>
    %cst_10 = arith.constant 0.000000e+00 : f32
    %30 = vector.broadcast %cst_10 : f32 to vector<2x48xf32>
    %31 = arith.maximumf %29, %30 : vector<2x48xf32>
    %c0_11 = arith.constant 0 : index
    %c0_12 = arith.constant 0 : index
    %32 = vector.load %arg4[%c0_11, %c0_12] : memref<48x128xf32, #tpu.memory_space<vmem>>, vector<48x128xf32>
    %cst_13 = arith.constant dense<0.000000e+00> : vector<2x128xf32>
    %33 = tpu.matmul %31, %32, %cst_13 {dimension_numbers = #tpu.dot_dimension_numbers<[1], [0], [0], [1], [0, 0, 1, 1], [], []>} : vector<2x48xf32>, vector<48x128xf32>, vector<2x128xf32> -> vector<2x128xf32>
    %c0_14 = arith.constant 0 : index
    %c0_15 = arith.constant 0 : index
    %34 = vector.load %arg5[%c0_14, %c0_15] : memref<1x128xf32, #tpu.memory_space<vmem>>, vector<1x128xf32>
    %35 = vector.broadcast %34 : vector<1x128xf32> to vector<2x128xf32>
    %36 = arith.addf %33, %35 : vector<2x128xf32>
    %c0_16 = arith.constant 0 : index
    %c0_17 = arith.constant 0 : index
    %37 = vector.load %arg6[%c0_16, %c0_17] : memref<2x128xf32, #tpu.memory_space<vmem>>, vector<2x128xf32>
    tpu.vector_store %arg6[%c0_16, %c0_17], %36 {strides = array<i32>} : memref<2x128xf32, #tpu.memory_space<vmem>>, vector<2x128xf32>,
    return
  }
}

</mosaic_0001>

<bundles_post_ra>
// kernel: tpu_custom_call.1
= control target key start
LH: loop header
LB: loop body
LE: loop exit
PB: predicated region body
PF: predicated region fallthrough
CT: control target
= control target key end

     0   :  { %11 = vsyncpa [#allocation3], 0  ;;  %s689_s0 = inlined_call_operand.vmem [shape: s32[32,1], index: 0, kind: input, shape index: {}]   ;;  %s690_s1 = inlined_call_operand.hbm [shape: bf16[50,240], index: 1, kind: input, shape index: {}]   ;;  %s691_s2 = inlined_call_operand.vmem [shape: f32[32,48], index: 2, kind: input, shape index: {}]   ;;  %s692_s3 = inlined_call_operand.vmem [shape: f32[1,48], index: 3, kind: input, shape index: {}]   ;;  %s693_s4 = inlined_call_operand.hbm [shape: f32[48,128], index: 4, kind: input, shape index: {}]   ;;  %s694_s5 = inlined_call_operand.vmem [shape: f32[1,128], index: 5, kind: input, shape index: {}]   ;;  %s695_s6 = inlined_call_operand.hbm [shape: f32[2,128], index: 6, kind: output, shape index: {}]  }
   0x1   :  { %12 = vsyncpa [#allocation6], 0 }
   0x2   :  { %13 = vsyncpa [#allocation4], 0  ;;  %s20_s23 = sshll.u32 %s690_s1, 4  ;;  %s529_s24 = smov [#allocation2]   ;;  %s21_s23 = int_to_ptr.hbm [resolvable:$true] %s20_s23 }
   0x3   :  { %s22_s25 = sshll.u32 %s529_s24, 4  ;;  %s37_s28 = sshll.u32 %s693_s4, 4  ;;  %s23_s25 = int_to_ptr.vmem [resolvable:$true] %s22_s25  ;;  %s38_s28 = int_to_ptr.hbm [resolvable:$true] %s37_s28 }
   0x4   :  { %s530_s29 = smov 128   ;;  %s531_s30 = smov 8  }
   0x5   :  { %28 = dma.hbm_to_vmem [thread:$0]  %s21_s23, 896, %s23_s25, [#allocation3], %s530_s29, %s530_s29, %s531_s30  }
   0x6   :  { %s532_s7 = smov [#allocation5]  }
   0x7   :  { %s39_s8 = sshll.u32 %s532_s7, 4  ;;  %s40_s8 = int_to_ptr.vmem [resolvable:$true] %s39_s8 }
   0x8   :  { %45 = dma.hbm_to_vmem [thread:$0]  %s38_s28, 768, %s40_s8, [#allocation6], %s530_s29, %s530_s29, %s531_s30  }
   0x9   :  { %523 = dma.done.wait [#allocation3], 896  }
   0xa   :  { %524 = vsyncadd [#allocation3], 4294966400 }
   0xb   :  { %525 = dma.done.wait [#allocation6], 768  }
   0xc   :  { %526 = vsyncadd [#allocation6], 4294966528  ;;  %v533_v0 = vmov 0   ;;  %v59_v1 = vld [vmem:[%s689_s0 + $0x10] sm:$0xff]  ;;  %v57_v2 = vld [vmem:[%s689_s0] sm:$0xff]  ;;  %vm134_vm0 = vcmask 1040384   ;;  %v61_v30 = vlaneseq }
   0xd   :  { %448 = vset.pattern.permute.xlu1 %v533_v0  ;;  %447 = vset.pattern.permute.xlu0 %v533_v0  ;;  %v91_v3 = vld [vmem:[#allocation2 + $0x30] sm:$0x11]  ;;  %v60_v8 = vld [vmem:[%s689_s0 + $0x18] sm:$0xff]  ;;  %v58_v9 = vld [vmem:[%s689_s0 + $0x8] sm:$0xff]  ;;  %vm127_vm5 = vcmask 408576   ;;  %v534_v36 = vmov 0.0  }
   0xe   :  { %70 = vperm.xlu0 %447, %v59_v1   ;;  %64 = vperm.xlu1 %448, %v57_v2   ;;  %v111_v4 = vunpack.c.l.b16 %v91_v3  ;;  %v112_v5 = vunpack.c.h.b16 %v91_v3  ;;  %v411_v12 = vld [vmem:[#allocation2 + $0x20] sm:$0xf]  ;;  %v427_v13 = vld [vmem:[#allocation2 + $0x24] sm:$0xf0]  ;;  %v426_v14 = vld [vmem:[#allocation2 + $0x24] sm:$0xf] }
   0xf   :  { %v412_v15 = vor.u32 %v427_v13, %v411_v12  ;;  %v413_v16 = vld [vmem:[#allocation2 + $0x28] sm:$0xf0]  ;;  %v403_v18 = vld [vmem:[#allocation2 + $0x10] sm:$0xf]  ;;  %v425_v19 = vld [vmem:[#allocation2 + $0x14] sm:$0xf0] }
  0x10   :  { %v119_v6 = vpack.c.b16 %v111_v4, %v111_v4  ;;  %v120_v7 = vpack.c.b16 %v112_v5, %v112_v5  ;;  %v416_v17 = vor.u32 %v426_v14, %v413_v16  ;;  %v424_v20 = vld [vmem:[#allocation2 + $0x14] sm:$0xf]  ;;  %v404_v21 = vor.u32 %v425_v19, %v403_v18  ;;  %v405_v22 = vld [vmem:[#allocation2 + $0x18] sm:$0xf0]  ;;  %v395_v24 = vld [vmem:[#allocation2] sm:$0xf] }
  0x11   :  { %v408_v23 = vor.u32 %v424_v20, %v405_v22  ;;  %v423_v25 = vld [vmem:[#allocation2 + $0x4] sm:$0xf0]  ;;  %v422_v26 = vld [vmem:[#allocation2 + $0x4] sm:$0xf]  ;;  %v397_v28 = vld [vmem:[#allocation2 + $0x8] sm:$0xf0] }
  0x12   :  { %v136_v10 = vsel %vm134_vm0, %v119_v6, 0  ;;  %v139_v11 = vsel %vm134_vm0, %v120_v7, 0  ;;  %v396_v27 = vor.u32 %v423_v25, %v395_v24  ;;  %v400_v29 = vor.u32 %v422_v26, %v397_v28  ;;  %s535_s0 = smov 32   ;;  %s536_s15 = smov 80   ;;  %v342_v62 = vld [vmem:[#allocation5 + $0x28] sm:$0xff]  ;;  %v341_v63 = vld [vmem:[#allocation5 + $0x20] sm:$0xff] }
  0x13   :  { %145 = vmatpush.bf16.msra.mxu0 %v136_v10  ;;  %428 = vmatpush.bf16.msra.mxu3 %v136_v10  ;;  %v62_v33 = vand.u32 127, %v61_v30  ;;  %s537_s16 = smov 112   ;;  %s538_s17 = smov 64   ;;  %v340_v1 = vld [vmem:[#allocation5 + $0x18] sm:$0xff]  ;;  %v339_v3 = vld [vmem:[#allocation5 + $0x10] sm:$0xff]  ;;  %v338_v4 = vld [vmem:[#allocation5 + $0x8] sm:$0xff] }
  0x14   :  { %164 = vmatpush.bf16.msra.mxu1 %v139_v11  ;;  %432 = vmatpush.bf16.msra.mxu2 %v139_v11  ;;  %v337_v6 = vld [vmem:[#allocation5] sm:$0xff]  ;;  %vm230_vm6 = vcmask 261120   ;;  %vm310_vm11 = vcmask 392192   ;;  %vm350_vm12 = vcmask 1041409   ;;  %s539_s29 = smov [#allocation7]  }
  0x15   :  { %s380_s30 = sshll.u32 %s539_s29, 4  ;;  %s381_s30 = int_to_ptr.vmem [resolvable:$true] %s380_s30 }
  0x16   :  { %73 = vperm.xlu0 %447, %v60_v8   ;;  %67 = vperm.xlu1 %448, %v58_v9   ;;  %v615_v8 = vshrl.u32 %v61_v30, 7 }
  0x17   :  { %146 = vmatpush.bf16.msra.mxu0 %v412_v15  ;;  %429 = vmatpush.bf16.msra.mxu3 %v412_v15 }
  0x18   :  { %165 = vmatpush.bf16.msra.mxu1 %v416_v17  ;;  %433 = vmatpush.bf16.msra.mxu2 %v416_v17  ;;  %vm201_vm7 = vcmp.lt.s32.totalorder %v615_v8, 7  ;;  %vm243_vm8 = vcmp.lt.s32.totalorder %v615_v8, 6  ;;  %vm268_vm9 = vcmp.lt.s32.totalorder %v615_v8, 5  ;;  %vm293_vm10 = vcmp.lt.s32.totalorder %v615_v8, 4 }
  0x1b   :  { %147 = vmatpush.bf16.msra.mxu0 %v404_v21  ;;  %430 = vmatpush.bf16.msra.mxu3 %v404_v21 }
  0x1c   :  { %166 = vmatpush.bf16.msra.mxu1 %v408_v23  ;;  %434 = vmatpush.bf16.msra.mxu2 %v408_v23 }
  0x1f   :  { %148 = vmatpush.bf16.msra.mxu0 %v396_v27  ;;  %431 = vmatpush.bf16.msra.mxu3 %v396_v27 }
  0x20   :  { %167 = vmatpush.bf16.msra.mxu1 %v400_v29  ;;  %435 = vmatpush.bf16.msra.mxu2 %v400_v29 }
  0x24   :  { %364 = vmatpush.msrb.mxu2 %v342_v62 }
  0x26   :  { %365 = vmatpush.msrb.mxu2 %v341_v63 }
  0x28   :  { %366 = vmatpush.msrb.mxu2 %v340_v1  ;;  %v304_v1 = vld [vmem:[%s691_s2 + $0x10] sm:$0xff] }
  0x2a   :  { %367 = vmatpush.msrb.mxu2 %v339_v3 }
  0x2c   :  { %368 = vmatpush.msrb.mxu2 %v338_v4 }
  0x2e   :  { %369 = vmatpush.msrb.mxu2 %v337_v6 }
  0x80   :  { %v71_v31 = vpop.permute.xlu0 %70  ;;  %v65_v32 = vpop.permute.xlu1 %64 }
  0x81   :  { %vm77_vm1 = vcmp.eq.s32.totalorder %v62_v33, %v71_v31  ;;  %vm75_vm2 = vcmp.eq.s32.totalorder %v62_v33, %v65_v32 }
  0x82   :  { %v81_v37 = vsel %vm77_vm1, 1.0, %v534_v36  ;;  %v79_v38 = vsel %vm75_vm2, 1.0, %v534_v36 }
  0x88   :  { %v74_v34 = vpop.permute.xlu0 %73  ;;  %v68_v35 = vpop.permute.xlu1 %67 }
  0x89   :  { %vm78_vm3 = vcmp.eq.s32.totalorder %v62_v33, %v74_v34  ;;  %vm76_vm4 = vcmp.eq.s32.totalorder %v62_v33, %v68_v35 }
  0x8a   :  { %v82_v39 = vsel %vm78_vm3, 1.0, %v534_v36  ;;  %v80_v40 = vsel %vm76_vm4, 1.0, %v534_v36 }
  0x8b   :  { %v84_v41 = vpack.c.bf16 %v82_v39, %v81_v37  ;;  %v83_v42 = vpack.c.bf16 %v80_v40, %v79_v38 }
  0x8d   :  { %417 = vmatmul.msk.bf16.vlgmr.msra.gmra.mxu0 %vm127_vm5, %v83_v42  ;;  %418 = vmatmul.msk.bf16.vlgmr.msra.gmra.mxu3 %vm127_vm5, %v84_v41 }
  0x8e   :  { %419 = vmatmul.msk.bf16.vlgmr.msra.gmra.mxu1 %vm127_vm5, %v83_v42  ;;  %420 = vmatmul.msk.bf16.vlgmr.msra.gmra.mxu2 %vm127_vm5, %v84_v41 }
 0x10a   :  { %v594_v43 = vpop.f32.mrf.mxu0 }
 0x10b   :  { %214 = vrot.lane.b32.xlu1 %v594_v43, %s535_s0  ;;  %183 = vrot.lane.b32.xlu2 %v594_v43, %s536_s15  ;;  %v169_v44 = vpop.f32.mrf.mxu1 }
 0x110   :  { %v598_v45 = vpop.f32.mrf.mxu3 }
 0x111   :  { %222 = vrot.lane.b32.xlu0 %v598_v45, %s535_s0  ;;  %v174_v47 = vpop.f32.mrf.mxu2 }
 0x112   :  { %v604_v49 = vpop.f32.mrf.mxu0 }
 0x113   :  { %252 = vrot.lane.b32.xlu1 %v169_v44, %s537_s16  ;;  %216 = vrot.lane.b32.xlu2 %v169_v44, %s535_s0  ;;  %v171_v46 = vpop.f32.mrf.mxu1 }
 0x118   :  { %v601_v48 = vpop.f32.mrf.mxu3 }
 0x119   :  { %220 = vrot.lane.b32.xlu0 %v171_v46, %s535_s0  ;;  %v176_v50 = vpop.f32.mrf.mxu2 }
 0x11b   :  { %224 = vrot.lane.b32.xlu1 %v174_v47, %s535_s0  ;;  %277 = vrot.lane.b32.xlu2 %v169_v44, %s538_s17 }
 0x121   :  { %189 = vrot.lane.b32.xlu0 %v601_v48, %s536_s15 }
 0x123   :  { %187 = vrot.lane.b32.xlu2 %v598_v45, %s536_s15  ;;  %185 = vrot.lane.b32.xlu1 %v604_v49, %s536_s15 }
 0x129   :  { %228 = vrot.lane.b32.xlu0 %v176_v50, %s535_s0 }
 0x12b   :  { %256 = vrot.lane.b32.xlu2 %v174_v47, %s537_s16  ;;  %254 = vrot.lane.b32.xlu1 %v171_v46, %s537_s16 }
 0x131   :  { %258 = vrot.lane.b32.xlu0 %v176_v50, %s537_s16 }
 0x133   :  { %218 = vrot.lane.b32.xlu2 %v604_v49, %s535_s0  ;;  %283 = vrot.lane.b32.xlu1 %v176_v50, %s538_s17 }
 0x139   :  { %281 = vrot.lane.b32.xlu0 %v174_v47, %s538_s17 }
 0x13b   :  { %226 = vrot.lane.b32.xlu2 %v601_v48, %s535_s0 }
 0x143   :  { %279 = vrot.lane.b32.xlu2 %v171_v46, %s538_s17 }
 0x165   :  { %v184_v51 = vpop.permute.xlu2 %183 }
 0x166   :  { %v195_v10 = vrot.slane %v184_v51, 1 }
 0x16d   :  { %v217_v52 = vpop.permute.xlu2 %216 }
 0x175   :  { %v610_v53 = vpop.permute.xlu2 %277 }
 0x176   :  { %v289_v34 = vrot.slane %v610_v53, 4 }
 0x17d   :  { %v215_v54 = vpop.permute.xlu1 %214  ;;  %v188_v55 = vpop.permute.xlu2 %187 }
 0x17e   :  { %v231_v13 = vsel %vm230_vm6, %v215_v54, %v217_v52  ;;  %v197_v23 = vrot.slane %v188_v55, 1 }
 0x17f   :  { %v239_v18 = vrot.slane %v231_v13, 2 }
 0x183   :  { %v223_v56 = vpop.permute.xlu0 %222 }
 0x185   :  { %v253_v57 = vpop.permute.xlu1 %252  ;;  %v612_v58 = vpop.permute.xlu2 %256 }
 0x186   :  { %v264_v24 = vrot.slane %v253_v57, 3  ;;  %v266_v47 = vrot.slane %v612_v58, 3 }
 0x18b   :  { %v221_v59 = vpop.permute.xlu0 %220 }
 0x18d   :  { %v225_v60 = vpop.permute.xlu1 %224  ;;  %v219_v61 = vpop.permute.xlu2 %218 }
 0x18e   :  { %v232_v14 = vsel %vm230_vm6, %v219_v61, %v221_v59  ;;  %v233_v25 = vsel %vm230_vm6, %v223_v56, %v225_v60  ;;  %v305_v60 = vld [vmem:[%s691_s2 + $0x18] sm:$0xff] }
 0x18f   :  { %v240_v19 = vrot.slane %v232_v14, 2  ;;  %v241_v35 = vrot.slane %v233_v25, 2 }
 0x191   :  { %v246_v30 = vsel %vm243_vm8, %v239_v18, %v240_v19  ;;  %v245_v52 = vsel %vm243_vm8, %v240_v19, %v241_v35 }
 0x193   :  { %v190_v0 = vpop.permute.xlu0 %189 }
 0x194   :  { %v198_v11 = vrot.slane %v190_v0, 1  ;;  %v303_v0 = vld [vmem:[%s691_s2 + $0x8] sm:$0xff] }
 0x195   :  { %v186_v2 = vpop.permute.xlu1 %185  ;;  %v227_v5 = vpop.permute.xlu2 %226 }
 0x196   :  { %v196_v7 = vrot.slane %v186_v2, 1  ;;  %v205_v20 = vsel %vm201_vm7, %v198_v11, %v195_v10  ;;  %v202_v39 = vsel %vm201_vm7, %v197_v23, %v198_v11 }
 0x197   :  { %v209_v27 = vadd.f32 %v205_v20, %v601_v48  ;;  %v208_v51 = vadd.f32 %v202_v39, %v598_v45  ;;  %v302_v45 = vld [vmem:[%s691_s2] sm:$0xff] }
 0x198   :  { %v204_v16 = vsel %vm201_vm7, %v195_v10, %v196_v7  ;;  %v203_v31 = vsel %vm201_vm7, %v196_v7, %v197_v23 }
 0x199   :  { %v206_v22 = vadd.f32 %v204_v16, %v594_v43  ;;  %v207_v43 = vadd.f32 %v203_v31, %v604_v49 }
 0x19b   :  { %v229_v9 = vpop.permute.xlu0 %228  ;;  %v248_v37 = vadd.f32 %v246_v30, %v206_v22  ;;  %v249_v56 = vadd.f32 %v245_v52, %v207_v43 }
 0x19c   :  { %v234_v12 = vsel %vm230_vm6, %v227_v5, %v229_v9 }
 0x19d   :  { %v255_v15 = vpop.permute.xlu1 %254  ;;  %v242_v17 = vrot.slane %v234_v12, 2  ;;  %v280_v28 = vpop.permute.xlu2 %279 }
 0x19e   :  { %v265_v21 = vrot.slane %v255_v15, 3  ;;  %v290_v40 = vrot.slane %v280_v28, 4 }
 0x19f   :  { %v247_v26 = vsel %vm243_vm8, %v242_v17, %v239_v18  ;;  %v244_v48 = vsel %vm243_vm8, %v241_v35, %v242_v17  ;;  %v450_v35 = vld [vmem:[%s694_s5] ss:$0 sm:$0xff] }
 0x1a0   :  { %v271_v32 = vsel %vm268_vm9, %v264_v24, %v265_v21  ;;  %v251_v36 = vadd.f32 %v247_v26, %v209_v27  ;;  %v296_v49 = vsel %vm293_vm10, %v289_v34, %v290_v40  ;;  %v270_v53 = vsel %vm268_vm9, %v265_v21, %v266_v47  ;;  %v449_v26 = vld [vmem:[%s692_s3] ss:$0 sm:$0xff]  ;;  %s382_s3 = sshll.u32 %s695_s6, 4  ;;  %s383_s3 = int_to_ptr.hbm [resolvable:$true] %s382_s3 }
 0x1a1   :  { %v273_v44 = vadd.f32 %v271_v32, %v248_v37  ;;  %v250_v55 = vadd.f32 %v244_v48, %v208_v51  ;;  %v274_v62 = vadd.f32 %v270_v53, %v249_v56 }
 0x1a3   :  { %v259_v29 = vpop.permute.xlu0 %258  ;;  %v298_v57 = vadd.f32 %v296_v49, %v273_v44 }
 0x1a4   :  { %v267_v33 = vrot.slane %v259_v29, 3 }
 0x1a5   :  { %v284_v38 = vpop.permute.xlu1 %283  ;;  %v306_v4 = vadd.f32 %v302_v45, %v298_v57 }
 0x1a6   :  { %v272_v41 = vsel %vm268_vm9, %v267_v33, %v264_v24  ;;  %v292_v42 = vrot.slane %v284_v38, 4  ;;  %v269_v54 = vsel %vm268_vm9, %v266_v47, %v267_v33 }
 0x1a7   :  { %v276_v46 = vadd.f32 %v272_v41, %v251_v36  ;;  %v275_v63 = vadd.f32 %v269_v54, %v250_v55  ;;  %v311_v11 = vsel %vm310_vm11, %v306_v4, -inf }
 0x1a8   :  { %v297_v50 = vsel %vm293_vm10, %v292_v42, %v289_v34 }
 0x1a9   :  { %v301_v58 = vadd.f32 %v297_v50, %v276_v46 }
 0x1ab   :  { %v282_v59 = vpop.permute.xlu0 %281  ;;  %v309_v5 = vadd.f32 %v305_v60, %v301_v58 }
 0x1ac   :  { %v291_v61 = vrot.slane %v282_v59, 4 }
 0x1ad   :  { %v321_v14 = vsel %vm310_vm11, %v309_v5, -inf }
 0x1ae   :  { %v294_v2 = vsel %vm293_vm10, %v291_v61, %v292_v42  ;;  %v295_v3 = vsel %vm293_vm10, %v290_v40, %v291_v61 }
 0x1af   :  { %v299_v6 = vadd.f32 %v295_v3, %v274_v62  ;;  %v300_v7 = vadd.f32 %v294_v2, %v275_v63 }
 0x1b1   :  { %v307_v9 = vadd.f32 %v303_v0, %v299_v6  ;;  %v308_v10 = vadd.f32 %v304_v1, %v300_v7 }
 0x1b3   :  { %v312_v12 = vsel %vm310_vm11, %v307_v9, -inf  ;;  %v320_v13 = vsel %vm310_vm11, %v308_v10, -inf }
 0x1b4   :  { %v313_v15 = vmax.f32 %v311_v11, %v312_v12  ;;  %v322_v16 = vmax.f32 %v320_v13, %v321_v14 }
 0x1b6   :  { %v314_v17 = vrot.slane %v313_v15, 4  ;;  %v323_v8 = vrot.slane %v322_v16, 4 }
 0x1b8   :  { %v315_v18 = vmax.f32 %v313_v15, %v314_v17  ;;  %v324_v19 = vmax.f32 %v322_v16, %v323_v8 }
 0x1ba   :  { %v316_v20 = vrot.slane %v315_v18, 2  ;;  %v325_v21 = vrot.slane %v324_v19, 2 }
 0x1bc   :  { %v317_v22 = vmax.f32 %v315_v18, %v316_v20  ;;  %v326_v23 = vmax.f32 %v324_v19, %v325_v21 }
 0x1be   :  { %v318_v24 = vrot.slane %v317_v22, 1  ;;  %v327_v25 = vrot.slane %v326_v23, 1 }
 0x1c0   :  { %v319_v27 = vmax.f32 %v317_v22, %v318_v24  ;;  %v328_v28 = vmax.f32 %v326_v23, %v327_v25 }
 0x1c2   :  { %v333_v29 = vadd.f32 %v449_v26, %v319_v27  ;;  %v334_v30 = vadd.f32 %v449_v26, %v328_v28 }
 0x1c4   :  { %v336_v31 = vmax.f32 %v334_v30, 0.0  ;;  %v335_v32 = vmax.f32 %v333_v29, 0.0 }
 0x1c6   :  { %v349_v33 = vrot.slane %v336_v31, 7 }
 0x1c8   :  { %v351_v34 = vsel %vm350_vm12, %v349_v33, %v335_v32 }
 0x1c9   :  { %421 = vmatmul.msk.f32.vlgmr.msrb.gmra.mxu2 %vm310_vm11, %v351_v34 }
 0x24c   :  { %v371_v36 = vpop.f32.mrf.mxu2 }
 0x24d   :  { %v372_v37 = vadd.f32 %v450_v35, %v371_v36 }
 0x24f   :  { %374 = vst [vmem:[#allocation7] sm:$0x3] %v372_v37 }
 0x250   :  { %385 = dma.vmem_to_hbm [thread:$0]  %s381_s30, 32, %s383_s3, [#allocation4]  }
 0x251   :  { %527 = dma.done.wait [#allocation4], 32  }
 0x252   :  { %528 = vsyncadd [#allocation4], 4294967264 }
 0x253   :  { %390 = vsyncpa [#allocation3], 1 }
 0x254   :  { %391 = vsyncpa [#allocation6], 1 }
 0x255   :  { %392 = vsyncpa [#allocation4], 1 }

</bundles_post_ra>
